<compile_context>
chip_gen: v7x
topology: tpu7x:2x2x1
jax: 0.10.0
libtpu: 0.0.40
codegen_flags: <defaults>
</compile_context>

<pallas_src>
import functools

import jax
import jax.numpy as jnp
from jax.experimental import pallas as pl
from jax.experimental.pallas import tpu as pltpu


# ---------------------------------------------------------------------------
# Kernel: one batch tile; all weights resident (constant index maps).
# ---------------------------------------------------------------------------
def mlp_kernel(x_ref,
               w1_ref, b1_ref,
               w2_ref, b2_ref,
               w3_ref, b3_ref,
               w4_ref, b4_ref,
               o_ref):
    x = x_ref[...]                                       # (TILE_B, F) bf16

    # fc1 (BN/bias folded) -> relu -> dropout(identity)
    h = jnp.dot(x, w1_ref[...],
                preferred_element_type=jnp.float32) + b1_ref[...]
    h = jnp.maximum(h, 0.0)                              # f32; also the residual

    # fc2 (folded) -> relu -> dropout(identity) -> + residual (kept in f32)
    z = jnp.dot(h.astype(jnp.bfloat16), w2_ref[...],
                preferred_element_type=jnp.float32) + b2_ref[...]
    z = jnp.maximum(z, 0.0) + h

    # fc3 (folded) -> relu -> dropout(identity)
    g = jnp.dot(z.astype(jnp.bfloat16), w3_ref[...],
                preferred_element_type=jnp.float32) + b3_ref[...]
    g = jnp.maximum(g, 0.0)

    # fc4 (out dim 1): contract the 64-dims of the (1, 64) weight row against g
    # to get a lane-dense (1, TILE_B) row directly (no 1-lane masked stores).
    out_row = jax.lax.dot_general(
        w4_ref[...], g.astype(jnp.bfloat16),
        dimension_numbers=(((1,), (1,)), ((), ())),
        preferred_element_type=jnp.float32)              # (1, TILE_B)
    o_ref[...] = out_row + b4_ref[...]


# ---------------------------------------------------------------------------
# Wrapper: grid over batch tiles; weights with constant index maps.
# ---------------------------------------------------------------------------
def _round_up(x, m):
    return (x + m - 1) // m * m


def _choose_tile_b(batch, max_tile):
    """Batch tile: big enough to amortize per-step overhead, >= 2 grid steps
    when the batch allows (v7x megacore), sublane-aligned."""
    if batch <= 256:
        return _round_up(batch, 8)                  # single small tile
    if batch <= 2 * max_tile:
        return _round_up(pl.cdiv(batch, 2), 256)    # ~2 balanced tiles
    return max_tile


@functools.partial(jax.jit, static_argnames=("max_tile_b",))
def neural_network_forward(x, folded, *, max_tile_b=2048):
    """x: (B, input_size) float32 -> (B, 1) float32 (eval-mode forward)."""
    B, F = x.shape
    tile_b = _choose_tile_b(B, max_tile_b)
    n_tiles = pl.cdiv(B, tile_b)

    # bf16 matmul operands (MXU-native on v5e/v6e/v7x); f32 accumulation inside.
    x_bf = x.astype(jnp.bfloat16)
    w1, b1 = folded["w1"], folded["b1"]
    w2, b2 = folded["w2"], folded["b2"]
    w3, b3 = folded["w3"], folded["b3"]
    w4, b4 = folded["w4"], folded["b4"]              # w4 is a (1, 64) bf16 row

    const = lambda shape: pl.BlockSpec(shape, lambda i: (0, 0))

    layer_macs = F * 128 + 128 * 128 + 128 * 64 + 64
    flops = 2 * B * layer_macs
    bytes_accessed = (B * F * 2                      # x (bf16)
                      + n_tiles * tile_b * 4         # output (f32)
                      + layer_macs * 2               # bf16 weights (resident)
                      + (128 + 128 + 64 + 1) * 4)    # f32 biases

    out = pl.pallas_call(
        mlp_kernel,
        out_shape=jax.ShapeDtypeStruct((n_tiles, tile_b), jnp.float32),
        grid=(n_tiles,),
        in_specs=[
            # x tile, pipelined; final block may be partial (garbage tail rows
            # are row-independent and sliced off after the call).
            pl.BlockSpec((tile_b, F), lambda i: (i, 0)),
            const(w1.shape), const(b1.shape),
            const(w2.shape), const(b2.shape),
            const(w3.shape), const(b3.shape),
            const(w4.shape), const(b4.shape),
        ],
        out_specs=pl.BlockSpec((1, tile_b), lambda i: (i, 0)),  # lane-dense row
        compiler_params=pltpu.CompilerParams(
            dimension_semantics=("parallel",),       # megacore sharding on v7x
            vmem_limit_bytes=24 * 1024 * 1024,       # right-sized, ample headroom
        ),
        cost_estimate=pl.CostEstimate(
            flops=flops, transcendentals=0, bytes_accessed=bytes_accessed),
    )(x_bf, w1, b1, w2, b2, w3, b3, w4, b4)

    # (n_tiles, tile_b) lane-dense slab -> (B, 1); ragged tail rows dropped.
    return out.reshape(-1)[:B].reshape(B, 1)


# ---------------------------------------------------------------------------
# Parameter init (mirrors PyTorch __init__) and BN/bias folding.
# ---------------------------------------------------------------------------
def init_params(key, input_size):
    """Mirrors the PyTorch __init__: kaiming_normal_ (fan_in, relu) => std =
    sqrt(2/fan_in); biases 0; BN gamma=1, beta=0, running_mean=0,
    running_var=1, eps=1e-5."""
    def kaiming(k, fan_in, fan_out):
        std = (2.0 / fan_in) ** 0.5
        # PyTorch weight is (out, in); store transposed (in, out) for x @ W.
        return (jax.random.normal(k, (fan_out, fan_in), jnp.float32) * std).T

    k1, k2, k3, k4 = jax.random.split(key, 4)
    eps = 1e-5

    def bn_scale_shift(dim):
        gamma = jnp.ones((1, dim), jnp.float32)
        beta = jnp.zeros((1, dim), jnp.float32)
        running_mean = jnp.zeros((1, dim), jnp.float32)
        running_var = jnp.ones((1, dim), jnp.float32)
        scale = gamma / jnp.sqrt(running_var + eps)
        shift = beta - running_mean * scale
        return scale, shift

    s1, t1 = bn_scale_shift(128)
    s2, t2 = bn_scale_shift(128)
    s3, t3 = bn_scale_shift(64)

    return {
        "w1": kaiming(k1, input_size, 128), "b1": jnp.zeros((1, 128), jnp.float32),
        "s1": s1, "t1": t1,
        "w2": kaiming(k2, 128, 128), "b2": jnp.zeros((1, 128), jnp.float32),
        "s2": s2, "t2": t2,
        "w3": kaiming(k3, 128, 64), "b3": jnp.zeros((1, 64), jnp.float32),
        "s3": s3, "t3": t3,
        "w4": kaiming(k4, 64, 1), "b4": jnp.zeros((1, 1), jnp.float32),
    }


def fold_params(raw):
    """Fold eval-mode BN (scale s, shift t) and bias into each Linear:
       relu((x@W + b)*s + t) == relu(x@(W*s) + (b*s + t)).
    Weights are cast to bf16 (MXU operands); biases/shifts stay f32."""
    def fold(w, b, s, t):
        return (w * s).astype(jnp.bfloat16), b * s + t

    w1, b1 = fold(raw["w1"], raw["b1"], raw["s1"], raw["t1"])
    w2, b2 = fold(raw["w2"], raw["b2"], raw["s2"], raw["t2"])
    w3, b3 = fold(raw["w3"], raw["b3"], raw["s3"], raw["t3"])
    return {
        "w1": w1, "b1": b1,
        "w2": w2, "b2": b2,
        "w3": w3, "b3": b3,
        "w4": raw["w4"].T.astype(jnp.bfloat16),   # (1, 64) row for the fc4 dot
        "b4": raw["b4"],                          # (1, 1) f32
    }


def reference_forward(x, raw):
    """Pure-JAX f32 reference (unfolded BN applied explicitly)."""
    h = x @ raw["w1"] + raw["b1"]
    h = jnp.maximum(h * raw["s1"] + raw["t1"], 0.0)
    ident2 = h
    z = h @ raw["w2"] + raw["b2"]
    z = jnp.maximum(z * raw["s2"] + raw["t2"], 0.0) + ident2
    g = z @ raw["w3"] + raw["b3"]
    g = jnp.maximum(g * raw["s3"] + raw["t3"], 0.0)
    return g @ raw["w4"] + raw["b4"]


if __name__ == "__main__":
    key = jax.random.PRNGKey(0)
    k_params, k_x1, k_x2 = jax.random.split(key, 3)

    input_size = 16   # number of feature columns after dropping the 3 named cols
    raw = init_params(k_params, input_size)
    folded = fold_params(raw)

    # Case 1: tiny batch (single exact tile).
    x_small = jax.random.normal(k_x1, (8, input_size), jnp.float32)
    out_small = jax.block_until_ready(neural_network_forward(x_small, folded))
    ref_small = reference_forward(x_small, raw)
    assert out_small.shape == (8, 1)
    assert jnp.allclose(out_small, ref_small, atol=5e-2, rtol=5e-2), \
        "mismatch (small batch)"

    # Case 2: ragged batch (2 tiles of 256, final block partial, no jnp.pad).
    x_big = jax.random.normal(k_x2, (300, input_size), jnp.float32)
    out_big = jax.block_until_ready(neural_network_forward(x_big, folded))
    ref_big = reference_forward(x_big, raw)
    assert out_big.shape == (300, 1)
    assert jnp.allclose(out_big, ref_big, atol=5e-2, rtol=5e-2), \
        "mismatch (ragged batch)"

    print("KERNEL_OK")
</pallas_src>

<mosaic_0001>
module attributes {stable_mosaic.version = 11 : i64} {
  func.func @mlp_kernel(%arg0: i32, %arg1: memref<8x16xbf16, #tpu.memory_space<vmem>>, %arg2: memref<16x128xbf16, #tpu.memory_space<vmem>>, %arg3: memref<1x128xf32, #tpu.memory_space<vmem>>, %arg4: memref<128x128xbf16, #tpu.memory_space<vmem>>, %arg5: memref<1x128xf32, #tpu.memory_space<vmem>>, %arg6: memref<128x64xbf16, #tpu.memory_space<vmem>>, %arg7: memref<1x64xf32, #tpu.memory_space<vmem>>, %arg8: memref<1x64xbf16, #tpu.memory_space<vmem>>, %arg9: memref<1x1xf32, #tpu.memory_space<vmem>>, %arg10: memref<1x8xf32, #tpu.memory_space<vmem>>) attributes {dimension_semantics = [#tpu.dimension_semantics<parallel>], iteration_bounds = array<i64: 1>, scalar_prefetch = 0 : i64, scratch_operands = 0 : i64, tpu.core_type = #tpu.core_type<tc>, window_params = [{transform_indices = @transform_0, window_bounds = array<i64: 8, 16>}, {pipeline_mode = #tpu.pipeline_mode<synchronous>, transform_indices = @transform_1, window_bounds = array<i64: 16, 128>}, {pipeline_mode = #tpu.pipeline_mode<synchronous>, transform_indices = @transform_2, window_bounds = array<i64: 1, 128>}, {pipeline_mode = #tpu.pipeline_mode<synchronous>, transform_indices = @transform_3, window_bounds = array<i64: 128, 128>}, {pipeline_mode = #tpu.pipeline_mode<synchronous>, transform_indices = @transform_4, window_bounds = array<i64: 1, 128>}, {pipeline_mode = #tpu.pipeline_mode<synchronous>, transform_indices = @transform_5, window_bounds = array<i64: 128, 64>}, {pipeline_mode = #tpu.pipeline_mode<synchronous>, transform_indices = @transform_6, window_bounds = array<i64: 1, 64>}, {pipeline_mode = #tpu.pipeline_mode<synchronous>, transform_indices = @transform_7, window_bounds = array<i64: 1, 64>}, {pipeline_mode = #tpu.pipeline_mode<synchronous>, transform_indices = @transform_8, window_bounds = array<i64: 1, 1>}, {transform_indices = @transform_9, window_bounds = array<i64: 1, 8>}]} {
    %c0 = arith.constant 0 : index
    %c0_0 = arith.constant 0 : index
    %0 = vector.load %arg1[%c0, %c0_0] : memref<8x16xbf16, #tpu.memory_space<vmem>>, vector<8x16xbf16>
    %c0_1 = arith.constant 0 : index
    %c0_2 = arith.constant 0 : index
    %1 = vector.load %arg2[%c0_1, %c0_2] : memref<16x128xbf16, #tpu.memory_space<vmem>>, vector<16x128xbf16>
    %cst = arith.constant dense<0.000000e+00> : vector<8x128xf32>
    %2 = tpu.matmul %0, %1, %cst {dimension_numbers = #tpu.dot_dimension_numbers<[1], [0], [0], [1], [0, 0, 1, 1], [], []>} : vector<8x16xbf16>, vector<16x128xbf16>, vector<8x128xf32> -> vector<8x128xf32>
    %c0_3 = arith.constant 0 : index
    %c0_4 = arith.constant 0 : index
    %3 = vector.load %arg3[%c0_3, %c0_4] : memref<1x128xf32, #tpu.memory_space<vmem>>, vector<1x128xf32>
    %4 = vector.broadcast %3 : vector<1x128xf32> to vector<8x128xf32>
    %5 = arith.addf %2, %4 : vector<8x128xf32>
    %cst_5 = arith.constant 0.000000e+00 : f32
    %6 = vector.broadcast %cst_5 : f32 to vector<8x128xf32>
    %7 = arith.maximumf %5, %6 : vector<8x128xf32>
    %8 = arith.truncf %7 : vector<8x128xf32> to vector<8x128xbf16>
    %c0_6 = arith.constant 0 : index
    %c0_7 = arith.constant 0 : index
    %9 = vector.load %arg4[%c0_6, %c0_7] : memref<128x128xbf16, #tpu.memory_space<vmem>>, vector<128x128xbf16>
    %cst_8 = arith.constant dense<0.000000e+00> : vector<8x128xf32>
    %10 = tpu.matmul %8, %9, %cst_8 {dimension_numbers = #tpu.dot_dimension_numbers<[1], [0], [0], [1], [0, 0, 1, 1], [], []>} : vector<8x128xbf16>, vector<128x128xbf16>, vector<8x128xf32> -> vector<8x128xf32>
    %c0_9 = arith.constant 0 : index
    %c0_10 = arith.constant 0 : index
    %11 = vector.load %arg5[%c0_9, %c0_10] : memref<1x128xf32, #tpu.memory_space<vmem>>, vector<1x128xf32>
    %12 = vector.broadcast %11 : vector<1x128xf32> to vector<8x128xf32>
    %13 = arith.addf %10, %12 : vector<8x128xf32>
    %cst_11 = arith.constant 0.000000e+00 : f32
    %14 = vector.broadcast %cst_11 : f32 to vector<8x128xf32>
    %15 = arith.maximumf %13, %14 : vector<8x128xf32>
    %16 = arith.addf %15, %7 : vector<8x128xf32>
    %17 = arith.truncf %16 : vector<8x128xf32> to vector<8x128xbf16>
    %c0_12 = arith.constant 0 : index
    %c0_13 = arith.constant 0 : index
    %18 = vector.load %arg6[%c0_12, %c0_13] : memref<128x64xbf16, #tpu.memory_space<vmem>>, vector<128x64xbf16>
    %cst_14 = arith.constant dense<0.000000e+00> : vector<8x64xf32>
    %19 = tpu.matmul %17, %18, %cst_14 {dimension_numbers = #tpu.dot_dimension_numbers<[1], [0], [0], [1], [0, 0, 1, 1], [], []>} : vector<8x128xbf16>, vector<128x64xbf16>, vector<8x64xf32> -> vector<8x64xf32>
    %c0_15 = arith.constant 0 : index
    %c0_16 = arith.constant 0 : index
    %20 = vector.load %arg7[%c0_15, %c0_16] : memref<1x64xf32, #tpu.memory_space<vmem>>, vector<1x64xf32>
    %21 = vector.broadcast %20 : vector<1x64xf32> to vector<8x64xf32>
    %22 = arith.addf %19, %21 : vector<8x64xf32>
    %cst_17 = arith.constant 0.000000e+00 : f32
    %23 = vector.broadcast %cst_17 : f32 to vector<8x64xf32>
    %24 = arith.maximumf %22, %23 : vector<8x64xf32>
    %c0_18 = arith.constant 0 : index
    %c0_19 = arith.constant 0 : index
    %25 = vector.load %arg8[%c0_18, %c0_19] : memref<1x64xbf16, #tpu.memory_space<vmem>>, vector<1x64xbf16>
    %26 = arith.truncf %24 : vector<8x64xf32> to vector<8x64xbf16>
    %cst_20 = arith.constant dense<0.000000e+00> : vector<1x8xf32>
    %27 = tpu.matmul %25, %26, %cst_20 {dimension_numbers = #tpu.dot_dimension_numbers<[1], [1], [0], [0], [0, 0, 1, 0], [], []>} : vector<1x64xbf16>, vector<8x64xbf16>, vector<1x8xf32> -> vector<1x8xf32>
    %c0_21 = arith.constant 0 : index
    %c0_22 = arith.constant 0 : index
    %28 = vector.load %arg9[%c0_21, %c0_22] : memref<1x1xf32, #tpu.memory_space<vmem>>, vector<1x1xf32>
    %29 = vector.broadcast %28 : vector<1x1xf32> to vector<1x8xf32>
    %30 = arith.addf %27, %29 : vector<1x8xf32>
    %c0_23 = arith.constant 0 : index
    %c0_24 = arith.constant 0 : index
    %31 = vector.load %arg10[%c0_23, %c0_24] : memref<1x8xf32, #tpu.memory_space<vmem>>, vector<1x8xf32>
    tpu.vector_store %arg10[%c0_23, %c0_24], %30 {strides = array<i32>} : memref<1x8xf32, #tpu.memory_space<vmem>>, vector<1x8xf32>,
    return
  }
  func.func @transform_0(%arg0: i32) -> (i32, i32) {
    %c0_i32 = arith.constant 0 : i32
    %c0_i32_0 = arith.constant 0 : i32
    return %arg0, %c0_i32 : i32, i32
  }
  func.func @transform_1(%arg0: i32) -> (i32, i32) {
    %c0_i32 = arith.constant 0 : i32
    %c0_i32_0 = arith.constant 0 : i32
    %c0_i32_1 = arith.constant 0 : i32
    return %c0_i32, %c0_i32_0 : i32, i32
  }
  func.func @transform_2(%arg0: i32) -> (i32, i32) {
    %c0_i32 = arith.constant 0 : i32
    %c0_i32_0 = arith.constant 0 : i32
    %c0_i32_1 = arith.constant 0 : i32
    return %c0_i32, %c0_i32_0 : i32, i32
  }
  func.func @transform_3(%arg0: i32) -> (i32, i32) {
    %c0_i32 = arith.constant 0 : i32
    %c0_i32_0 = arith.constant 0 : i32
    %c0_i32_1 = arith.constant 0 : i32
    return %c0_i32, %c0_i32_0 : i32, i32
  }
  func.func @transform_4(%arg0: i32) -> (i32, i32) {
    %c0_i32 = arith.constant 0 : i32
    %c0_i32_0 = arith.constant 0 : i32
    %c0_i32_1 = arith.constant 0 : i32
    return %c0_i32, %c0_i32_0 : i32, i32
  }
  func.func @transform_5(%arg0: i32) -> (i32, i32) {
    %c0_i32 = arith.constant 0 : i32
    %c0_i32_0 = arith.constant 0 : i32
    %c0_i32_1 = arith.constant 0 : i32
    return %c0_i32, %c0_i32_0 : i32, i32
  }
  func.func @transform_6(%arg0: i32) -> (i32, i32) {
    %c0_i32 = arith.constant 0 : i32
    %c0_i32_0 = arith.constant 0 : i32
    %c0_i32_1 = arith.constant 0 : i32
    return %c0_i32, %c0_i32_0 : i32, i32
  }
  func.func @transform_7(%arg0: i32) -> (i32, i32) {
    %c0_i32 = arith.constant 0 : i32
    %c0_i32_0 = arith.constant 0 : i32
    %c0_i32_1 = arith.constant 0 : i32
    return %c0_i32, %c0_i32_0 : i32, i32
  }
  func.func @transform_8(%arg0: i32) -> (i32, i32) {
    %c0_i32 = arith.constant 0 : i32
    %c0_i32_0 = arith.constant 0 : i32
    %c0_i32_1 = arith.constant 0 : i32
    return %c0_i32, %c0_i32_0 : i32, i32
  }
  func.func @transform_9(%arg0: i32) -> (i32, i32) {
    %c0_i32 = arith.constant 0 : i32
    %c0_i32_0 = arith.constant 0 : i32
    return %arg0, %c0_i32 : i32, i32
  }
}

</mosaic_0001>

<bundles_post_ra>
// kernel: neural_network_forward.1
= control target key start
LH: loop header
LB: loop body
LE: loop exit
PB: predicated region body
PF: predicated region fallthrough
CT: control target
= control target key end

     0   :  { %s702_s0 = inlined_call_operand.vmem [shape: bf16[8,16], index: 0, kind: input, shape index: {}]   ;;  %s703_s1 = inlined_call_operand.vmem [shape: bf16[16,128], index: 1, kind: input, shape index: {}]   ;;  %s704_s2 = inlined_call_operand.vmem [shape: f32[1,128], index: 2, kind: input, shape index: {}]   ;;  %s705_s3 = inlined_call_operand.vmem [shape: bf16[128,128], index: 3, kind: input, shape index: {}]   ;;  %s706_s4 = inlined_call_operand.vmem [shape: f32[1,128], index: 4, kind: input, shape index: {}]   ;;  %s707_s5 = inlined_call_operand.vmem [shape: bf16[128,64], index: 5, kind: input, shape index: {}]   ;;  %s708_s6 = inlined_call_operand.vmem [shape: f32[1,64], index: 6, kind: input, shape index: {}]   ;;  %s709_s7 = inlined_call_operand.vmem [shape: bf16[1,64], index: 7, kind: input, shape index: {}]   ;;  %s710_s8 = inlined_call_operand.<no memory space> [shape: f32[1,1], index: 8, kind: input, shape index: {}]   ;;  %s711_s9 = inlined_call_operand.hbm [shape: f32[1,8], index: 9, kind: output, shape index: {}]  }
   0x1   :  { %v14_v0 = vstv %s710_s8 }
   0x2   :  { %15 = vst [vmem:[#allocation2] sm:$0x1] %v14_v0 }
   0x3   :  { %v500_v1 = vld [vmem:[%s703_s1] sm:$0xff]   ;;  %v541_v2 = vmov 0.0   ;;  %vm542_vm0 = vmmov 0   ;;  %vm52_vm1 = vcmask 130048   ;;  %v502_v5 = vld [vmem:[%s705_s3 + $0x8] sm:$0xff]   ;;  %v503_v6 = vld [vmem:[%s705_s3 + $0x10] sm:$0xff]  }
   0x4   :  { %443 = vmatprep.subr.bf16.mxu0 %v541_v2  ;;  %v36_v3 = vld [vmem:[%s702_s0] sm:$0xf]  ;;  %449 = vmatprep.subr.bf16.mxu1 %v541_v2  ;;  %v504_v7 = vld [vmem:[%s705_s3 + $0x18] sm:$0xff]  }
   0x5   :  { %444 = vmatpush3.bf16.msra.mxu0 %v500_v1  ;;  %445 = vmatprep.mubr.msk.bf16.mxu0 %vm542_vm0, %v541_v2  ;;  %v501_v4 = vld [vmem:[%s705_s3] sm:$0xff]  }
   0x6   :  { %465 = vmatprep.mubr.msk.bf16.mxu1 %vm542_vm0, %v541_v2  ;;  %469 = vmatprep.subr.bf16.mxu0 %v541_v2 }
   0x7   :  { %450 = vmatpush3.bf16.msra.mxu1 %v501_v4 }
   0x8   :  { %446 = vmatmul.mubr.msk.bf16.vlgmr.msra.gmra.mrb[0].mxu0 %vm52_vm1, %v36_v3  ;;  %451 = vmatprep.subr.bf16.mxu1 %v541_v2 }
   0x9   :  { %485 = vmatprep.mubr.msk.bf16.mxu0 %vm542_vm0, %v541_v2 }
   0xb   :  { %452 = vmatpush3.bf16.msra.mxu1 %v502_v5 }
   0xc   :  { %453 = vmatprep.subr.bf16.mxu1 %v541_v2 }
   0xf   :  { %454 = vmatpush3.bf16.msra.mxu1 %v503_v6 }
  0x10   :  { %455 = vmatprep.subr.bf16.mxu1 %v541_v2 }
  0x11   :  { %16 = vsyncpa [#allocation4], 0  ;;  %v505_v8 = vld [vmem:[%s705_s3 + $0x20] sm:$0xff]   ;;  %v506_v9 = vld [vmem:[%s705_s3 + $0x28] sm:$0xff]   ;;  %v543_v38 = vmov 0   ;;  %vm336_vm2 = vcmask 523264   ;;  %v332_v49 = vlaneseq }
  0x12   :  { %v507_v10 = vld [vmem:[%s705_s3 + $0x30] sm:$0xff]   ;;  %v508_v11 = vld [vmem:[%s705_s3 + $0x38] sm:$0xff]   ;;  %v509_v12 = vld [vmem:[%s707_s5] sm:$0xff]   ;;  %499 = vset.pattern.permute.xlu0 %v543_v38  ;;  %vm383_vm3 = vcmask 57344  }
  0x13   :  { %456 = vmatpush3.bf16.msra.mxu1 %v504_v7  ;;  %470 = vmatpush3.bf16.msra.mxu0 %v509_v12  ;;  %v510_v13 = vld [vmem:[%s707_s5 + $0x8] sm:$0xff]   ;;  %v511_v14 = vld [vmem:[%s707_s5 + $0x10] sm:$0xff]   ;;  %v512_v15 = vld [vmem:[%s707_s5 + $0x18] sm:$0xff]   ;;  %v333_v50 = vshrl.u32 %v332_v49, 7 }
  0x14   :  { %457 = vmatprep.subr.bf16.mxu1 %v541_v2  ;;  %471 = vmatprep.subr.bf16.mxu0 %v541_v2  ;;  %v513_v16 = vld [vmem:[%s707_s5 + $0x20] sm:$0xff]   ;;  %v514_v17 = vld [vmem:[%s707_s5 + $0x28] sm:$0xff]   ;;  %v515_v26 = vld [vmem:[%s707_s5 + $0x30] sm:$0xff]  }
  0x15   :  { %v399_v18 = vld [vmem:[%s704_s2] ss:$0 sm:$0xff]  ;;  %v516_v27 = vld [vmem:[%s707_s5 + $0x38] sm:$0xff]   ;;  %v334_v51 = vsub.s32 0, %v333_v50 }
  0x16   :  { %v402_v28 = vld [vmem:[%s706_s4] ss:$0 sm:$0xff] }
  0x17   :  { %458 = vmatpush3.bf16.msra.mxu1 %v505_v8  ;;  %472 = vmatpush3.bf16.msra.mxu0 %v510_v13  ;;  %v326_v37 = vld [vmem:[#allocation2] sm:$0x1] }
  0x18   :  { %459 = vmatprep.subr.bf16.mxu1 %v541_v2  ;;  %473 = vmatprep.subr.bf16.mxu0 %v541_v2  ;;  %v411_v39 = vld [vmem:[%s708_s6] ss:$0 sm:$0xff]  ;;  %s544_s6 = smov [#allocation3]  }
  0x19   :  { %329 = vperm.xlu0 %499, %v326_v37   ;;  %v324_v48 = vld [vmem:[%s709_s7] sm:$0x1]  ;;  %s391_s24 = sshll.u32 %s544_s6, 4  ;;  %s392_s24 = int_to_ptr.vmem [resolvable:$true] %s391_s24 }
  0x1a   :  { %s517_s25 = scalar_lea.vmem %s392_s24, 16  ;;  %s521_s26 = scalar_lea.vmem %s392_s24, 32 }
  0x1b   :  { %460 = vmatpush3.bf16.msra.mxu1 %v506_v9  ;;  %474 = vmatpush3.bf16.msra.mxu0 %v511_v14  ;;  %p518_p0 = scmp.ne.s32.totalorder %s392_s24, %s517_s25  ;;  %p522_p1 = scmp.lt.s32.totalorder %s392_s24, %s392_s24 }
  0x1c   :  { %461 = vmatprep.subr.bf16.mxu1 %v541_v2  ;;  %475 = vmatprep.subr.bf16.mxu0 %v541_v2  ;;  %p523_p2 = scmp.lt.s32.totalorder %s521_s26, %s517_s25 }
  0x1e   :  { %p524_p3 = por %p523_p2, %p522_p1 }
  0x1f   :  { %462 = vmatpush3.bf16.msra.mxu1 %v507_v10  ;;  %476 = vmatpush3.bf16.msra.mxu0 %v512_v15 }
  0x20   :  { %463 = vmatprep.subr.bf16.mxu1 %v541_v2  ;;  %477 = vmatprep.subr.bf16.mxu0 %v541_v2  ;;  %p525_p4 = pnand %p524_p3, %p518_p0 }
  0x23   :  { %464 = vmatpush3.bf16.msra.mxu1 %v508_v11  ;;  %478 = vmatpush3.bf16.msra.mxu0 %v513_v16 }
  0x24   :  { %489 = vmatprep.subr.bf16.mxu1 %v541_v2  ;;  %479 = vmatprep.subr.bf16.mxu0 %v541_v2 }
  0x27   :  { %480 = vmatpush3.bf16.msra.mxu0 %v514_v17 }
  0x28   :  { %481 = vmatprep.subr.bf16.mxu0 %v541_v2 }
  0x2b   :  { %482 = vmatpush3.bf16.msra.mxu0 %v515_v26 }
  0x2c   :  { %483 = vmatprep.subr.bf16.mxu0 %v541_v2 }
  0x2f   :  { %484 = vmatpush3.bf16.msra.mxu0 %v516_v27 }
  0x98   :  { %v330_v52 = vpop.permute.xlu0 %329 }
  0x99   :  { %v335_v53 = vrot.slane %v330_v52, %v334_v51 }
  0xdb   :  { %v90_v19 = vpop.f32.mrb[0].mxu0 }
  0xdc   :  { %v91_v20 = vadd.f32 %v399_v18, %v90_v19  ;;  %v447_v21 = vpop.f32.mrb[1].mxu0 }
  0xdd   :  { %v93_v22 = vpop.f32.mrb[2].mxu0 }
  0xde   :  { %v96_v23 = vmax.f32 %v91_v20, 0.0  ;;  %v448_v24 = vpop.f32.mrb[3].mxu0 }
  0xe0   :  { %v97_v25 = vpack.c.bf16 %v96_v23, %v96_v23 }
  0xe2   :  { %466 = vmatmul.mubr.bf16.vlgmr.msra.gmra.mrb[0].mxu1 %v97_v25 }
  0xe3   :  { %491 = vmatprep.mubr.msk.bf16.mxu1 %vm542_vm0, %v541_v2 }
 0x1b5   :  { %v203_v29 = vpop.f32.mrb[0].mxu1 }
 0x1b6   :  { %v204_v30 = vadd.f32 %v402_v28, %v203_v29  ;;  %v467_v31 = vpop.f32.mrb[1].mxu1 }
 0x1b7   :  { %v206_v32 = vpop.f32.mrb[2].mxu1 }
 0x1b8   :  { %v209_v33 = vmax.f32 %v204_v30, 0.0  ;;  %v468_v34 = vpop.f32.mrb[3].mxu1 }
 0x1ba   :  { %v210_v35 = vadd.f32 %v209_v33, %v96_v23 }
 0x1bc   :  { %v211_v36 = vpack.c.bf16 %v210_v35, %v210_v35 }
 0x1be   :  { %486 = vmatmul.mubr.bf16.vlgmr.msra.gmra.mrb[4].mxu0 %v211_v36 }
 0x291   :  { %v317_v40 = vpop.f32.mrb[4].mxu0 }
 0x292   :  { %v318_v41 = vadd.f32 %v411_v39, %v317_v40  ;;  %v487_v42 = vpop.f32.mrb[5].mxu0 }
 0x293   :  { %v320_v43 = vpop.f32.mrb[6].mxu0 }
 0x294   :  { %v323_v44 = vmax.f32 %v318_v41, 0.0  ;;  %v488_v45 = vpop.f32.mrb[7].mxu0 }
 0x296   :  { %v325_v46 = vpack.c.bf16 %v323_v44, %v323_v44 }
 0x298   :  { %v341_v47 = vsel %vm336_vm2, %v325_v46, 0 }
 0x299   :  { %490 = vmatpush3.bf16.xpose.msra.mxu1 %v341_v47 }
 0x2a0   :  { %492 = vmatmul.mubr.msk.bf16.vlgmr.msra.gmra.mrb[4].mxu1 %vm336_vm2, %v324_v48 }
 0x373   :  { %v377_v54 = vpop.f32.mrb[4].mxu1 }
 0x374   :  { %v378_v55 = vadd.f32 %v377_v54, %v335_v53  ;;  %v493_v56 = vpop.f32.mrb[5].mxu1 }
 0x375   :  { %v380_v57 = vpop.f32.mrb[6].mxu1 }
 0x376   :  { %v494_v58 = vpop.f32.mrb[7].mxu1  ;;  %384 = vst.msk [vmem:[#allocation3] sm:$0x1] %vm383_vm3, %v378_v55 }
 0x377   :  { %528 = shalt.err (!%p525_p4)
}
 0x378   :  { %s529_s28 = scalar_lea.hbm %s711_s9, 16 }
 0x379   :  { %p530_p5 = scmp.ne.s32.totalorder %s711_s9, %s529_s28  ;;  %p533_p6 = scmp.lt.u32.totalorder %s529_s28, %s711_s9 }
 0x37b   :  { %p535_p7 = pnand %p533_p6, %p530_p5 }
 0x37d   :  { %538 = shalt.err (!%p535_p7)
}
 0x37e   :  { %394 = dma.vmem_to_hbm [thread:$0]  %s392_s24, 16, %s711_s9, [#allocation4]  }
 0x37f   :  { %539 = dma.done.wait [#allocation4], 16  }
 0x380   :  { %540 = vsyncadd [#allocation4], 4294967280 }
 0x381   :  { %398 = vsyncpa [#allocation4], 1 }

</bundles_post_ra>
